<compile_context>
chip_gen: v5e
topology: v5e:2x2
jax: 0.10.0
libtpu: 0.0.40
codegen_flags: <defaults>
</compile_context>

<pallas_src>
import functools

import jax
import jax.numpy as jnp
from jax.experimental import pallas as pl
from jax.experimental.pallas import tpu as pltpu

EPS = 1e-5  # nn.InstanceNorm2d default


def _resnet_block_kernel(x_ref, w1_ref, b1_ref, w2_ref, b2_ref, o_ref, *, H, W):
    x = x_ref[0]                       # (C, HW) float32
    C, HW = x.shape

    # Lane-position masks for the reflect-pad boundary fix-ups (built once, reused).
    lane = jax.lax.broadcasted_iota(jnp.int32, (C, HW), 1)
    col = lane % W
    top_row = lane < W                     # first image row
    bot_row = lane >= (H - 1) * W          # last image row
    left_col = col == 0                    # first image column
    right_col = col == W - 1               # last image column

    def row_shift(a, dy):
        # result[y, x] = a[reflect(y + dy), x]; shifts are lane rolls by W (XLU).
        if dy == 0:
            return a
        down = pltpu.roll(a, W, axis=1)        # a[y - 1, x]
        up = pltpu.roll(a, HW - W, axis=1)     # a[y + 1, x]
        if dy < 0:
            return jnp.where(top_row, up, down)
        return jnp.where(bot_row, down, up)

    def col_shift(a, dx):
        # result[y, x] = a[y, reflect(x + dx)]; shifts are lane rolls by 1 (XLU).
        if dx == 0:
            return a
        right = pltpu.roll(a, 1, axis=1)       # a[y, x - 1]
        left = pltpu.roll(a, HW - 1, axis=1)   # a[y, x + 1]
        if dx < 0:
            return jnp.where(left_col, left, right)
        return jnp.where(right_col, right, left)

    def conv3x3(a, w_ref, b_ref):
        # w_ref: (9, Cout, Cin) bf16 with tap index t = kdy*3 + kdx; b_ref: (C, 1) f32.
        acc = jnp.zeros((C, HW), dtype=jnp.float32)
        for kdy in range(3):
            r = row_shift(a, kdy - 1)
            for kdx in range(3):
                s = col_shift(r, kdx - 1)
                acc = acc + jnp.dot(
                    w_ref[kdy * 3 + kdx],                 # bf16 (Cout, Cin)
                    s.astype(jnp.bfloat16),               # bf16 (Cin, HW)
                    preferred_element_type=jnp.float32)   # f32 accumulation
        return acc + b_ref[...]                           # (C, 1) broadcast over lanes

    def instance_norm(a):
        # Per-channel stats over the spatial (lane) axis, single pass, f32.
        inv_n = 1.0 / HW
        s1 = jnp.sum(a, axis=1, keepdims=True)
        s2 = jnp.sum(a * a, axis=1, keepdims=True)
        mean = s1 * inv_n
        var = jnp.maximum(s2 * inv_n - mean * mean, 0.0)
        return (a - mean) * jax.lax.rsqrt(var + EPS)

    h = conv3x3(x, w1_ref, b1_ref)
    h = jnp.maximum(instance_norm(h), 0.0)     # ReLU
    # TODO(synk): use_dropout=False configuration chosen; Dropout(0.5) not implemented.
    h = conv3x3(h, w2_ref, b2_ref)
    h = instance_norm(h)
    o_ref[0] = x + h                           # residual add in f32


@jax.jit
def resnet_block(x_nchw, w1, b1, w2, b2):
    """x_nchw: (N, C, H, W) f32; w*: (Cout, Cin, 3, 3) PyTorch OIHW; b*: (C,)."""
    N, C, H, W = x_nchw.shape
    HW = H * W

    # Stay in NCHW: only free contiguous reshapes, no image transposes in HBM.
    x2 = x_nchw.reshape(N, C, HW).astype(jnp.float32)
    # Weights: OIHW -> (tap, Cout, Cin), bf16 operands for the MXU (tiny arrays).
    w1r = jnp.transpose(w1, (2, 3, 0, 1)).reshape(9, C, C).astype(jnp.bfloat16)
    w2r = jnp.transpose(w2, (2, 3, 0, 1)).reshape(9, C, C).astype(jnp.bfloat16)
    b1r = b1.reshape(C, 1).astype(jnp.float32)
    b2r = b2.reshape(C, 1).astype(jnp.float32)

    kernel = functools.partial(_resnet_block_kernel, H=H, W=W)

    flops = N * 2 * 2 * 9 * C * C * HW              # 2 convs, 2 flop per MAC
    bytes_accessed = (2 * N * C * HW * 4            # image in + out (f32)
                      + 2 * 9 * C * C * 2           # weights (bf16)
                      + 2 * C * 4)                  # biases (f32)

    out = pl.pallas_call(
        kernel,
        out_shape=jax.ShapeDtypeStruct((N, C, HW), jnp.float32),
        grid=(N,),
        in_specs=[
            pl.BlockSpec((1, C, HW), lambda n: (n, 0, 0)),
            pl.BlockSpec((9, C, C), lambda n: (0, 0, 0)),
            pl.BlockSpec((C, 1), lambda n: (0, 0)),
            pl.BlockSpec((9, C, C), lambda n: (0, 0, 0)),
            pl.BlockSpec((C, 1), lambda n: (0, 0)),
        ],
        out_specs=pl.BlockSpec((1, C, HW), lambda n: (n, 0, 0)),
        compiler_params=pltpu.CompilerParams(dimension_semantics=("parallel",)),
        cost_estimate=pl.CostEstimate(flops=flops, transcendentals=2 * N * C,
                                      bytes_accessed=bytes_accessed),
    )(x2, w1r, b1r, w2r, b2r)

    return out.reshape(N, C, H, W)


def reference(x, w1, b1, w2, b2, conv_dtype=jnp.float32):
    """Pure-JAX reference (reflect pad, InstanceNorm, no affine). conv_dtype=bf16
    emulates the kernel's bf16-operand / f32-accumulation matmuls exactly."""
    def conv(a, w, b):
        ap = jnp.pad(a, ((0, 0), (0, 0), (1, 1), (1, 1)), mode="reflect")
        y = jax.lax.conv_general_dilated(
            ap.astype(conv_dtype), w.astype(conv_dtype), (1, 1), "VALID",
            dimension_numbers=("NCHW", "OIHW", "NCHW"),
            preferred_element_type=jnp.float32)
        return y + b[None, :, None, None].astype(jnp.float32)

    def inorm(a):
        mean = a.mean(axis=(2, 3), keepdims=True)
        var = ((a - mean) ** 2).mean(axis=(2, 3), keepdims=True)
        return (a - mean) / jnp.sqrt(var + EPS)

    h = jnp.maximum(inorm(conv(x, w1, b1)), 0.0)
    h = inorm(conv(h, w2, b2))
    return x + h


if __name__ == "__main__":
    key = jax.random.PRNGKey(0)
    N, C, H, W = 2, 4, 16, 16
    k_x, k_w1, k_b1, k_w2, k_b2 = jax.random.split(key, 5)

    x = jax.random.normal(k_x, (N, C, H, W), dtype=jnp.float32)
    # Deterministic synthetic parameters (Conv2d(dim, dim, 3, bias=True) shapes).
    w1 = 0.1 * jax.random.normal(k_w1, (C, C, 3, 3), dtype=jnp.float32)
    b1 = 0.1 * jax.random.normal(k_b1, (C,), dtype=jnp.float32)
    w2 = 0.1 * jax.random.normal(k_w2, (C, C, 3, 3), dtype=jnp.float32)
    b2 = 0.1 * jax.random.normal(k_b2, (C,), dtype=jnp.float32)

    out = resnet_block(x, w1, b1, w2, b2)
    jax.block_until_ready(out)
    assert out.shape == (N, C, H, W)

    # Semantics check against a bf16-conv-operand reference (matches kernel precision).
    ref16 = reference(x, w1, b1, w2, b2, conv_dtype=jnp.bfloat16)
    err16 = float(jnp.max(jnp.abs(out - ref16)))
    assert err16 < 5e-3, f"mismatch vs bf16-operand reference: {err16}"

    # Sanity check against the full-f32 reference (slack = bf16 matmul-operand noise).
    ref32 = reference(x, w1, b1, w2, b2, conv_dtype=jnp.float32)
    err32 = float(jnp.max(jnp.abs(out - ref32)))
    assert err32 < 1e-1, f"mismatch vs f32 reference: {err32}"

    print("KERNEL_OK")
</pallas_src>

<mosaic_0001>
module attributes {stable_mosaic.version = 11 : i64} {
  func.func @_resnet_block_kernel(%arg0: i32, %arg1: memref<1x4x256xf32, #tpu.memory_space<vmem>>, %arg2: memref<9x4x4xbf16, #tpu.memory_space<vmem>>, %arg3: memref<4x1xf32, #tpu.memory_space<vmem>>, %arg4: memref<9x4x4xbf16, #tpu.memory_space<vmem>>, %arg5: memref<4x1xf32, #tpu.memory_space<vmem>>, %arg6: memref<1x4x256xf32, #tpu.memory_space<vmem>>) attributes {dimension_semantics = [#tpu.dimension_semantics<parallel>], iteration_bounds = array<i64: 2>, scalar_prefetch = 0 : i64, scratch_operands = 0 : i64, tpu.core_type = #tpu.core_type<tc>, window_params = [{transform_indices = @transform_0, window_bounds = array<i64: 1, 4, 256>}, {pipeline_mode = #tpu.pipeline_mode<synchronous>, transform_indices = @transform_1, window_bounds = array<i64: 9, 4, 4>}, {pipeline_mode = #tpu.pipeline_mode<synchronous>, transform_indices = @transform_2, window_bounds = array<i64: 4, 1>}, {pipeline_mode = #tpu.pipeline_mode<synchronous>, transform_indices = @transform_3, window_bounds = array<i64: 9, 4, 4>}, {pipeline_mode = #tpu.pipeline_mode<synchronous>, transform_indices = @transform_4, window_bounds = array<i64: 4, 1>}, {transform_indices = @transform_5, window_bounds = array<i64: 1, 4, 256>}]} {
    %c0 = arith.constant 0 : index
    %c0_0 = arith.constant 0 : index
    %c0_1 = arith.constant 0 : index
    %0 = vector.load %arg1[%c0, %c0_0, %c0_1] : memref<1x4x256xf32, #tpu.memory_space<vmem>>, vector<1x4x256xf32>
    %1 = vector.shape_cast %0 : vector<1x4x256xf32> to vector<4x256xf32>
    %2 = tpu.iota {dimensions = array<i32: 1>} : vector<4x256xi32>
    %c16_i32 = arith.constant 16 : i32
    %c0_i32 = arith.constant 0 : i32
    %3 = arith.cmpi eq, %c16_i32, %c0_i32 : i32
    %c1_i32 = arith.constant 1 : i32
    %4 = arith.select %3, %c1_i32, %c16_i32 : i32
    %5 = vector.broadcast %4 : i32 to vector<4x256xi32>
    %6 = arith.remsi %2, %5 : vector<4x256xi32>
    %c0_i32_2 = arith.constant 0 : i32
    %7 = vector.broadcast %c0_i32_2 : i32 to vector<4x256xi32>
    %8 = arith.cmpi ne, %6, %7 : vector<4x256xi32>
    %c0_i32_3 = arith.constant 0 : i32
    %9 = vector.broadcast %c0_i32_3 : i32 to vector<4x256xi32>
    %10 = arith.cmpi slt, %6, %9 : vector<4x256xi32>
    %c0_i32_4 = arith.constant 0 : i32
    %11 = arith.cmpi slt, %4, %c0_i32_4 : i32
    %12 = vector.broadcast %11 : i1 to vector<4x256xi1>
    %13 = vector.broadcast %12 : vector<4x256xi1> to vector<4x256xi1>
    %14 = arith.xori %10, %13 : vector<4x256xi1>
    %15 = arith.andi %14, %8 : vector<4x256xi1>
    %16 = vector.broadcast %4 : i32 to vector<4x256xi32>
    %17 = arith.addi %6, %16 : vector<4x256xi32>
    %18 = arith.select %15, %17, %6 : vector<4x256xi1>, vector<4x256xi32>
    %c16_i32_5 = arith.constant 16 : i32
    %19 = vector.broadcast %c16_i32_5 : i32 to vector<4x256xi32>
    %20 = arith.cmpi slt, %2, %19 : vector<4x256xi32>
    %c240_i32 = arith.constant 240 : i32
    %21 = vector.broadcast %c240_i32 : i32 to vector<4x256xi32>
    %22 = arith.cmpi sge, %2, %21 : vector<4x256xi32>
    %c0_i32_6 = arith.constant 0 : i32
    %23 = vector.broadcast %c0_i32_6 : i32 to vector<4x256xi32>
    %24 = arith.cmpi eq, %18, %23 : vector<4x256xi32>
    %c15_i32 = arith.constant 15 : i32
    %25 = vector.broadcast %c15_i32 : i32 to vector<4x256xi32>
    %26 = arith.cmpi eq, %18, %25 : vector<4x256xi32>
    %cst = arith.constant 0.000000e+00 : f32
    %27 = vector.broadcast %cst : f32 to vector<4x256xf32>
    %c16_i32_7 = arith.constant 16 : i32
    %28 = tpu.dynamic_rotate %1 by %c16_i32_7 dim 1 : vector<4x256xf32>, i32 -> vector<4x256xf32>
    %c240_i32_8 = arith.constant 240 : i32
    %29 = tpu.dynamic_rotate %1 by %c240_i32_8 dim 1 : vector<4x256xf32>, i32 -> vector<4x256xf32>
    %30 = arith.select %20, %29, %28 : vector<4x256xi1>, vector<4x256xf32>
    %c1_i32_9 = arith.constant 1 : i32
    %31 = tpu.dynamic_rotate %30 by %c1_i32_9 dim 1 : vector<4x256xf32>, i32 -> vector<4x256xf32>
    %c255_i32 = arith.constant 255 : i32
    %32 = tpu.dynamic_rotate %30 by %c255_i32 dim 1 : vector<4x256xf32>, i32 -> vector<4x256xf32>
    %33 = arith.select %24, %32, %31 : vector<4x256xi1>, vector<4x256xf32>
    %c0_10 = arith.constant 0 : index
    %c0_11 = arith.constant 0 : index
    %c0_12 = arith.constant 0 : index
    %34 = vector.load %arg2[%c0_10, %c0_11, %c0_12] : memref<9x4x4xbf16, #tpu.memory_space<vmem>>, vector<1x4x4xbf16>
    %35 = vector.shape_cast %34 : vector<1x4x4xbf16> to vector<4x4xbf16>
    %36 = arith.truncf %33 : vector<4x256xf32> to vector<4x256xbf16>
    %cst_13 = arith.constant dense<0.000000e+00> : vector<4x256xf32>
    %37 = tpu.matmul %35, %36, %cst_13 {dimension_numbers = #tpu.dot_dimension_numbers<[1], [0], [0], [1], [0, 0, 1, 1], [], []>} : vector<4x4xbf16>, vector<4x256xbf16>, vector<4x256xf32> -> vector<4x256xf32>
    %38 = arith.addf %27, %37 : vector<4x256xf32>
    %c1 = arith.constant 1 : index
    %c0_14 = arith.constant 0 : index
    %c0_15 = arith.constant 0 : index
    %39 = vector.load %arg2[%c1, %c0_14, %c0_15] : memref<9x4x4xbf16, #tpu.memory_space<vmem>>, vector<1x4x4xbf16>
    %40 = vector.shape_cast %39 : vector<1x4x4xbf16> to vector<4x4xbf16>
    %41 = arith.truncf %30 : vector<4x256xf32> to vector<4x256xbf16>
    %cst_16 = arith.constant dense<0.000000e+00> : vector<4x256xf32>
    %42 = tpu.matmul %40, %41, %cst_16 {dimension_numbers = #tpu.dot_dimension_numbers<[1], [0], [0], [1], [0, 0, 1, 1], [], []>} : vector<4x4xbf16>, vector<4x256xbf16>, vector<4x256xf32> -> vector<4x256xf32>
    %43 = arith.addf %38, %42 : vector<4x256xf32>
    %c1_i32_17 = arith.constant 1 : i32
    %44 = tpu.dynamic_rotate %30 by %c1_i32_17 dim 1 : vector<4x256xf32>, i32 -> vector<4x256xf32>
    %c255_i32_18 = arith.constant 255 : i32
    %45 = tpu.dynamic_rotate %30 by %c255_i32_18 dim 1 : vector<4x256xf32>, i32 -> vector<4x256xf32>
    %46 = arith.select %26, %44, %45 : vector<4x256xi1>, vector<4x256xf32>
    %c2 = arith.constant 2 : index
    %c0_19 = arith.constant 0 : index
    %c0_20 = arith.constant 0 : index
    %47 = vector.load %arg2[%c2, %c0_19, %c0_20] : memref<9x4x4xbf16, #tpu.memory_space<vmem>>, vector<1x4x4xbf16>
    %48 = vector.shape_cast %47 : vector<1x4x4xbf16> to vector<4x4xbf16>
    %49 = arith.truncf %46 : vector<4x256xf32> to vector<4x256xbf16>
    %cst_21 = arith.constant dense<0.000000e+00> : vector<4x256xf32>
    %50 = tpu.matmul %48, %49, %cst_21 {dimension_numbers = #tpu.dot_dimension_numbers<[1], [0], [0], [1], [0, 0, 1, 1], [], []>} : vector<4x4xbf16>, vector<4x256xbf16>, vector<4x256xf32> -> vector<4x256xf32>
    %51 = arith.addf %43, %50 : vector<4x256xf32>
    %c1_i32_22 = arith.constant 1 : i32
    %52 = tpu.dynamic_rotate %1 by %c1_i32_22 dim 1 : vector<4x256xf32>, i32 -> vector<4x256xf32>
    %c255_i32_23 = arith.constant 255 : i32
    %53 = tpu.dynamic_rotate %1 by %c255_i32_23 dim 1 : vector<4x256xf32>, i32 -> vector<4x256xf32>
    %54 = arith.select %24, %53, %52 : vector<4x256xi1>, vector<4x256xf32>
    %c3 = arith.constant 3 : index
    %c0_24 = arith.constant 0 : index
    %c0_25 = arith.constant 0 : index
    %55 = vector.load %arg2[%c3, %c0_24, %c0_25] : memref<9x4x4xbf16, #tpu.memory_space<vmem>>, vector<1x4x4xbf16>
    %56 = vector.shape_cast %55 : vector<1x4x4xbf16> to vector<4x4xbf16>
    %57 = arith.truncf %54 : vector<4x256xf32> to vector<4x256xbf16>
    %cst_26 = arith.constant dense<0.000000e+00> : vector<4x256xf32>
    %58 = tpu.matmul %56, %57, %cst_26 {dimension_numbers = #tpu.dot_dimension_numbers<[1], [0], [0], [1], [0, 0, 1, 1], [], []>} : vector<4x4xbf16>, vector<4x256xbf16>, vector<4x256xf32> -> vector<4x256xf32>
    %59 = arith.addf %51, %58 : vector<4x256xf32>
    %c4 = arith.constant 4 : index
    %c0_27 = arith.constant 0 : index
    %c0_28 = arith.constant 0 : index
    %60 = vector.load %arg2[%c4, %c0_27, %c0_28] : memref<9x4x4xbf16, #tpu.memory_space<vmem>>, vector<1x4x4xbf16>
    %61 = vector.shape_cast %60 : vector<1x4x4xbf16> to vector<4x4xbf16>
    %62 = arith.truncf %1 : vector<4x256xf32> to vector<4x256xbf16>
    %cst_29 = arith.constant dense<0.000000e+00> : vector<4x256xf32>
    %63 = tpu.matmul %61, %62, %cst_29 {dimension_numbers = #tpu.dot_dimension_numbers<[1], [0], [0], [1], [0, 0, 1, 1], [], []>} : vector<4x4xbf16>, vector<4x256xbf16>, vector<4x256xf32> -> vector<4x256xf32>
    %64 = arith.addf %59, %63 : vector<4x256xf32>
    %c1_i32_30 = arith.constant 1 : i32
    %65 = tpu.dynamic_rotate %1 by %c1_i32_30 dim 1 : vector<4x256xf32>, i32 -> vector<4x256xf32>
    %c255_i32_31 = arith.constant 255 : i32
    %66 = tpu.dynamic_rotate %1 by %c255_i32_31 dim 1 : vector<4x256xf32>, i32 -> vector<4x256xf32>
    %67 = arith.select %26, %65, %66 : vector<4x256xi1>, vector<4x256xf32>
    %c5 = arith.constant 5 : index
    %c0_32 = arith.constant 0 : index
    %c0_33 = arith.constant 0 : index
    %68 = vector.load %arg2[%c5, %c0_32, %c0_33] : memref<9x4x4xbf16, #tpu.memory_space<vmem>>, vector<1x4x4xbf16>
    %69 = vector.shape_cast %68 : vector<1x4x4xbf16> to vector<4x4xbf16>
    %70 = arith.truncf %67 : vector<4x256xf32> to vector<4x256xbf16>
    %cst_34 = arith.constant dense<0.000000e+00> : vector<4x256xf32>
    %71 = tpu.matmul %69, %70, %cst_34 {dimension_numbers = #tpu.dot_dimension_numbers<[1], [0], [0], [1], [0, 0, 1, 1], [], []>} : vector<4x4xbf16>, vector<4x256xbf16>, vector<4x256xf32> -> vector<4x256xf32>
    %72 = arith.addf %64, %71 : vector<4x256xf32>
    %c16_i32_35 = arith.constant 16 : i32
    %73 = tpu.dynamic_rotate %1 by %c16_i32_35 dim 1 : vector<4x256xf32>, i32 -> vector<4x256xf32>
    %c240_i32_36 = arith.constant 240 : i32
    %74 = tpu.dynamic_rotate %1 by %c240_i32_36 dim 1 : vector<4x256xf32>, i32 -> vector<4x256xf32>
    %75 = arith.select %22, %73, %74 : vector<4x256xi1>, vector<4x256xf32>
    %c1_i32_37 = arith.constant 1 : i32
    %76 = tpu.dynamic_rotate %75 by %c1_i32_37 dim 1 : vector<4x256xf32>, i32 -> vector<4x256xf32>
    %c255_i32_38 = arith.constant 255 : i32
    %77 = tpu.dynamic_rotate %75 by %c255_i32_38 dim 1 : vector<4x256xf32>, i32 -> vector<4x256xf32>
    %78 = arith.select %24, %77, %76 : vector<4x256xi1>, vector<4x256xf32>
    %c6 = arith.constant 6 : index
    %c0_39 = arith.constant 0 : index
    %c0_40 = arith.constant 0 : index
    %79 = vector.load %arg2[%c6, %c0_39, %c0_40] : memref<9x4x4xbf16, #tpu.memory_space<vmem>>, vector<1x4x4xbf16>
    %80 = vector.shape_cast %79 : vector<1x4x4xbf16> to vector<4x4xbf16>
    %81 = arith.truncf %78 : vector<4x256xf32> to vector<4x256xbf16>
    %cst_41 = arith.constant dense<0.000000e+00> : vector<4x256xf32>
    %82 = tpu.matmul %80, %81, %cst_41 {dimension_numbers = #tpu.dot_dimension_numbers<[1], [0], [0], [1], [0, 0, 1, 1], [], []>} : vector<4x4xbf16>, vector<4x256xbf16>, vector<4x256xf32> -> vector<4x256xf32>
    %83 = arith.addf %72, %82 : vector<4x256xf32>
    %c7 = arith.constant 7 : index
    %c0_42 = arith.constant 0 : index
    %c0_43 = arith.constant 0 : index
    %84 = vector.load %arg2[%c7, %c0_42, %c0_43] : memref<9x4x4xbf16, #tpu.memory_space<vmem>>, vector<1x4x4xbf16>
    %85 = vector.shape_cast %84 : vector<1x4x4xbf16> to vector<4x4xbf16>
    %86 = arith.truncf %75 : vector<4x256xf32> to vector<4x256xbf16>
    %cst_44 = arith.constant dense<0.000000e+00> : vector<4x256xf32>
    %87 = tpu.matmul %85, %86, %cst_44 {dimension_numbers = #tpu.dot_dimension_numbers<[1], [0], [0], [1], [0, 0, 1, 1], [], []>} : vector<4x4xbf16>, vector<4x256xbf16>, vector<4x256xf32> -> vector<4x256xf32>
    %88 = arith.addf %83, %87 : vector<4x256xf32>
    %c1_i32_45 = arith.constant 1 : i32
    %89 = tpu.dynamic_rotate %75 by %c1_i32_45 dim 1 : vector<4x256xf32>, i32 -> vector<4x256xf32>
    %c255_i32_46 = arith.constant 255 : i32
    %90 = tpu.dynamic_rotate %75 by %c255_i32_46 dim 1 : vector<4x256xf32>, i32 -> vector<4x256xf32>
    %91 = arith.select %26, %89, %90 : vector<4x256xi1>, vector<4x256xf32>
    %c8 = arith.constant 8 : index
    %c0_47 = arith.constant 0 : index
    %c0_48 = arith.constant 0 : index
    %92 = vector.load %arg2[%c8, %c0_47, %c0_48] : memref<9x4x4xbf16, #tpu.memory_space<vmem>>, vector<1x4x4xbf16>
    %93 = vector.shape_cast %92 : vector<1x4x4xbf16> to vector<4x4xbf16>
    %94 = arith.truncf %91 : vector<4x256xf32> to vector<4x256xbf16>
    %cst_49 = arith.constant dense<0.000000e+00> : vector<4x256xf32>
    %95 = tpu.matmul %93, %94, %cst_49 {dimension_numbers = #tpu.dot_dimension_numbers<[1], [0], [0], [1], [0, 0, 1, 1], [], []>} : vector<4x4xbf16>, vector<4x256xbf16>, vector<4x256xf32> -> vector<4x256xf32>
    %96 = arith.addf %88, %95 : vector<4x256xf32>
    %c0_50 = arith.constant 0 : index
    %c0_51 = arith.constant 0 : index
    %97 = vector.load %arg3[%c0_50, %c0_51] : memref<4x1xf32, #tpu.memory_space<vmem>>, vector<4x1xf32>
    %98 = vector.broadcast %97 : vector<4x1xf32> to vector<4x256xf32>
    %99 = arith.addf %96, %98 : vector<4x256xf32>
    %cst_52 = arith.constant dense<0.000000e+00> : vector<4xf32>
    %100 = vector.multi_reduction <add>, %99, %cst_52 [1] : vector<4x256xf32> to vector<4xf32>
    %101 = vector.shape_cast %100 : vector<4xf32> to vector<4x1xf32>
    %102 = arith.mulf %99, %99 : vector<4x256xf32>
    %cst_53 = arith.constant dense<0.000000e+00> : vector<4xf32>
    %103 = vector.multi_reduction <add>, %102, %cst_53 [1] : vector<4x256xf32> to vector<4xf32>
    %104 = vector.shape_cast %103 : vector<4xf32> to vector<4x1xf32>
    %cst_54 = arith.constant 3.906250e-03 : f32
    %105 = vector.broadcast %cst_54 : f32 to vector<4x1xf32>
    %106 = arith.mulf %101, %105 : vector<4x1xf32>
    %cst_55 = arith.constant 3.906250e-03 : f32
    %107 = vector.broadcast %cst_55 : f32 to vector<4x1xf32>
    %108 = arith.mulf %104, %107 : vector<4x1xf32>
    %109 = arith.mulf %106, %106 : vector<4x1xf32>
    %110 = arith.subf %108, %109 : vector<4x1xf32>
    %cst_56 = arith.constant 0.000000e+00 : f32
    %111 = vector.broadcast %cst_56 : f32 to vector<4x1xf32>
    %112 = arith.maximumf %110, %111 : vector<4x1xf32>
    %113 = vector.broadcast %106 : vector<4x1xf32> to vector<4x256xf32>
    %114 = arith.subf %99, %113 : vector<4x256xf32>
    %cst_57 = arith.constant 9.99999974E-6 : f32
    %115 = vector.broadcast %cst_57 : f32 to vector<4x1xf32>
    %116 = arith.addf %112, %115 : vector<4x1xf32>
    %117 = math.rsqrt %116 : vector<4x1xf32>
    %118 = vector.broadcast %117 : vector<4x1xf32> to vector<4x256xf32>
    %119 = arith.mulf %114, %118 : vector<4x256xf32>
    %cst_58 = arith.constant 0.000000e+00 : f32
    %120 = vector.broadcast %cst_58 : f32 to vector<4x256xf32>
    %121 = arith.maximumf %119, %120 : vector<4x256xf32>
    %cst_59 = arith.constant 0.000000e+00 : f32
    %122 = vector.broadcast %cst_59 : f32 to vector<4x256xf32>
    %c16_i32_60 = arith.constant 16 : i32
    %123 = tpu.dynamic_rotate %121 by %c16_i32_60 dim 1 : vector<4x256xf32>, i32 -> vector<4x256xf32>
    %c240_i32_61 = arith.constant 240 : i32
    %124 = tpu.dynamic_rotate %121 by %c240_i32_61 dim 1 : vector<4x256xf32>, i32 -> vector<4x256xf32>
    %125 = arith.select %20, %124, %123 : vector<4x256xi1>, vector<4x256xf32>
    %c1_i32_62 = arith.constant 1 : i32
    %126 = tpu.dynamic_rotate %125 by %c1_i32_62 dim 1 : vector<4x256xf32>, i32 -> vector<4x256xf32>
    %c255_i32_63 = arith.constant 255 : i32
    %127 = tpu.dynamic_rotate %125 by %c255_i32_63 dim 1 : vector<4x256xf32>, i32 -> vector<4x256xf32>
    %128 = arith.select %24, %127, %126 : vector<4x256xi1>, vector<4x256xf32>
    %c0_64 = arith.constant 0 : index
    %c0_65 = arith.constant 0 : index
    %c0_66 = arith.constant 0 : index
    %129 = vector.load %arg4[%c0_64, %c0_65, %c0_66] : memref<9x4x4xbf16, #tpu.memory_space<vmem>>, vector<1x4x4xbf16>
    %130 = vector.shape_cast %129 : vector<1x4x4xbf16> to vector<4x4xbf16>
    %131 = arith.truncf %128 : vector<4x256xf32> to vector<4x256xbf16>
    %cst_67 = arith.constant dense<0.000000e+00> : vector<4x256xf32>
    %132 = tpu.matmul %130, %131, %cst_67 {dimension_numbers = #tpu.dot_dimension_numbers<[1], [0], [0], [1], [0, 0, 1, 1], [], []>} : vector<4x4xbf16>, vector<4x256xbf16>, vector<4x256xf32> -> vector<4x256xf32>
    %133 = arith.addf %122, %132 : vector<4x256xf32>
    %c1_68 = arith.constant 1 : index
    %c0_69 = arith.constant 0 : index
    %c0_70 = arith.constant 0 : index
    %134 = vector.load %arg4[%c1_68, %c0_69, %c0_70] : memref<9x4x4xbf16, #tpu.memory_space<vmem>>, vector<1x4x4xbf16>
    %135 = vector.shape_cast %134 : vector<1x4x4xbf16> to vector<4x4xbf16>
    %136 = arith.truncf %125 : vector<4x256xf32> to vector<4x256xbf16>
    %cst_71 = arith.constant dense<0.000000e+00> : vector<4x256xf32>
    %137 = tpu.matmul %135, %136, %cst_71 {dimension_numbers = #tpu.dot_dimension_numbers<[1], [0], [0], [1], [0, 0, 1, 1], [], []>} : vector<4x4xbf16>, vector<4x256xbf16>, vector<4x256xf32> -> vector<4x256xf32>
    %138 = arith.addf %133, %137 : vector<4x256xf32>
    %c1_i32_72 = arith.constant 1 : i32
    %139 = tpu.dynamic_rotate %125 by %c1_i32_72 dim 1 : vector<4x256xf32>, i32 -> vector<4x256xf32>
    %c255_i32_73 = arith.constant 255 : i32
    %140 = tpu.dynamic_rotate %125 by %c255_i32_73 dim 1 : vector<4x256xf32>, i32 -> vector<4x256xf32>
    %141 = arith.select %26, %139, %140 : vector<4x256xi1>, vector<4x256xf32>
    %c2_74 = arith.constant 2 : index
    %c0_75 = arith.constant 0 : index
    %c0_76 = arith.constant 0 : index
    %142 = vector.load %arg4[%c2_74, %c0_75, %c0_76] : memref<9x4x4xbf16, #tpu.memory_space<vmem>>, vector<1x4x4xbf16>
    %143 = vector.shape_cast %142 : vector<1x4x4xbf16> to vector<4x4xbf16>
    %144 = arith.truncf %141 : vector<4x256xf32> to vector<4x256xbf16>
    %cst_77 = arith.constant dense<0.000000e+00> : vector<4x256xf32>
    %145 = tpu.matmul %143, %144, %cst_77 {dimension_numbers = #tpu.dot_dimension_numbers<[1], [0], [0], [1], [0, 0, 1, 1], [], []>} : vector<4x4xbf16>, vector<4x256xbf16>, vector<4x256xf32> -> vector<4x256xf32>
    %146 = arith.addf %138, %145 : vector<4x256xf32>
    %c1_i32_78 = arith.constant 1 : i32
    %147 = tpu.dynamic_rotate %121 by %c1_i32_78 dim 1 : vector<4x256xf32>, i32 -> vector<4x256xf32>
    %c255_i32_79 = arith.constant 255 : i32
    %148 = tpu.dynamic_rotate %121 by %c255_i32_79 dim 1 : vector<4x256xf32>, i32 -> vector<4x256xf32>
    %149 = arith.select %24, %148, %147 : vector<4x256xi1>, vector<4x256xf32>
    %c3_80 = arith.constant 3 : index
    %c0_81 = arith.constant 0 : index
    %c0_82 = arith.constant 0 : index
    %150 = vector.load %arg4[%c3_80, %c0_81, %c0_82] : memref<9x4x4xbf16, #tpu.memory_space<vmem>>, vector<1x4x4xbf16>
    %151 = vector.shape_cast %150 : vector<1x4x4xbf16> to vector<4x4xbf16>
    %152 = arith.truncf %149 : vector<4x256xf32> to vector<4x256xbf16>
    %cst_83 = arith.constant dense<0.000000e+00> : vector<4x256xf32>
    %153 = tpu.matmul %151, %152, %cst_83 {dimension_numbers = #tpu.dot_dimension_numbers<[1], [0], [0], [1], [0, 0, 1, 1], [], []>} : vector<4x4xbf16>, vector<4x256xbf16>, vector<4x256xf32> -> vector<4x256xf32>
    %154 = arith.addf %146, %153 : vector<4x256xf32>
    %c4_84 = arith.constant 4 : index
    %c0_85 = arith.constant 0 : index
    %c0_86 = arith.constant 0 : index
    %155 = vector.load %arg4[%c4_84, %c0_85, %c0_86] : memref<9x4x4xbf16, #tpu.memory_space<vmem>>, vector<1x4x4xbf16>
    %156 = vector.shape_cast %155 : vector<1x4x4xbf16> to vector<4x4xbf16>
    %157 = arith.truncf %121 : vector<4x256xf32> to vector<4x256xbf16>
    %cst_87 = arith.constant dense<0.000000e+00> : vector<4x256xf32>
    %158 = tpu.matmul %156, %157, %cst_87 {dimension_numbers = #tpu.dot_dimension_numbers<[1], [0], [0], [1], [0, 0, 1, 1], [], []>} : vector<4x4xbf16>, vector<4x256xbf16>, vector<4x256xf32> -> vector<4x256xf32>
    %159 = arith.addf %154, %158 : vector<4x256xf32>
    %c1_i32_88 = arith.constant 1 : i32
    %160 = tpu.dynamic_rotate %121 by %c1_i32_88 dim 1 : vector<4x256xf32>, i32 -> vector<4x256xf32>
    %c255_i32_89 = arith.constant 255 : i32
    %161 = tpu.dynamic_rotate %121 by %c255_i32_89 dim 1 : vector<4x256xf32>, i32 -> vector<4x256xf32>
    %162 = arith.select %26, %160, %161 : vector<4x256xi1>, vector<4x256xf32>
    %c5_90 = arith.constant 5 : index
    %c0_91 = arith.constant 0 : index
    %c0_92 = arith.constant 0 : index
    %163 = vector.load %arg4[%c5_90, %c0_91, %c0_92] : memref<9x4x4xbf16, #tpu.memory_space<vmem>>, vector<1x4x4xbf16>
    %164 = vector.shape_cast %163 : vector<1x4x4xbf16> to vector<4x4xbf16>
    %165 = arith.truncf %162 : vector<4x256xf32> to vector<4x256xbf16>
    %cst_93 = arith.constant dense<0.000000e+00> : vector<4x256xf32>
    %166 = tpu.matmul %164, %165, %cst_93 {dimension_numbers = #tpu.dot_dimension_numbers<[1], [0], [0], [1], [0, 0, 1, 1], [], []>} : vector<4x4xbf16>, vector<4x256xbf16>, vector<4x256xf32> -> vector<4x256xf32>
    %167 = arith.addf %159, %166 : vector<4x256xf32>
    %c16_i32_94 = arith.constant 16 : i32
    %168 = tpu.dynamic_rotate %121 by %c16_i32_94 dim 1 : vector<4x256xf32>, i32 -> vector<4x256xf32>
    %c240_i32_95 = arith.constant 240 : i32
    %169 = tpu.dynamic_rotate %121 by %c240_i32_95 dim 1 : vector<4x256xf32>, i32 -> vector<4x256xf32>
    %170 = arith.select %22, %168, %169 : vector<4x256xi1>, vector<4x256xf32>
    %c1_i32_96 = arith.constant 1 : i32
    %171 = tpu.dynamic_rotate %170 by %c1_i32_96 dim 1 : vector<4x256xf32>, i32 -> vector<4x256xf32>
    %c255_i32_97 = arith.constant 255 : i32
    %172 = tpu.dynamic_rotate %170 by %c255_i32_97 dim 1 : vector<4x256xf32>, i32 -> vector<4x256xf32>
    %173 = arith.select %24, %172, %171 : vector<4x256xi1>, vector<4x256xf32>
    %c6_98 = arith.constant 6 : index
    %c0_99 = arith.constant 0 : index
    %c0_100 = arith.constant 0 : index
    %174 = vector.load %arg4[%c6_98, %c0_99, %c0_100] : memref<9x4x4xbf16, #tpu.memory_space<vmem>>, vector<1x4x4xbf16>
    %175 = vector.shape_cast %174 : vector<1x4x4xbf16> to vector<4x4xbf16>
    %176 = arith.truncf %173 : vector<4x256xf32> to vector<4x256xbf16>
    %cst_101 = arith.constant dense<0.000000e+00> : vector<4x256xf32>
    %177 = tpu.matmul %175, %176, %cst_101 {dimension_numbers = #tpu.dot_dimension_numbers<[1], [0], [0], [1], [0, 0, 1, 1], [], []>} : vector<4x4xbf16>, vector<4x256xbf16>, vector<4x256xf32> -> vector<4x256xf32>
    %178 = arith.addf %167, %177 : vector<4x256xf32>
    %c7_102 = arith.constant 7 : index
    %c0_103 = arith.constant 0 : index
    %c0_104 = arith.constant 0 : index
    %179 = vector.load %arg4[%c7_102, %c0_103, %c0_104] : memref<9x4x4xbf16, #tpu.memory_space<vmem>>, vector<1x4x4xbf16>
    %180 = vector.shape_cast %179 : vector<1x4x4xbf16> to vector<4x4xbf16>
    %181 = arith.truncf %170 : vector<4x256xf32> to vector<4x256xbf16>
    %cst_105 = arith.constant dense<0.000000e+00> : vector<4x256xf32>
    %182 = tpu.matmul %180, %181, %cst_105 {dimension_numbers = #tpu.dot_dimension_numbers<[1], [0], [0], [1], [0, 0, 1, 1], [], []>} : vector<4x4xbf16>, vector<4x256xbf16>, vector<4x256xf32> -> vector<4x256xf32>
    %183 = arith.addf %178, %182 : vector<4x256xf32>
    %c1_i32_106 = arith.constant 1 : i32
    %184 = tpu.dynamic_rotate %170 by %c1_i32_106 dim 1 : vector<4x256xf32>, i32 -> vector<4x256xf32>
    %c255_i32_107 = arith.constant 255 : i32
    %185 = tpu.dynamic_rotate %170 by %c255_i32_107 dim 1 : vector<4x256xf32>, i32 -> vector<4x256xf32>
    %186 = arith.select %26, %184, %185 : vector<4x256xi1>, vector<4x256xf32>
    %c8_108 = arith.constant 8 : index
    %c0_109 = arith.constant 0 : index
    %c0_110 = arith.constant 0 : index
    %187 = vector.load %arg4[%c8_108, %c0_109, %c0_110] : memref<9x4x4xbf16, #tpu.memory_space<vmem>>, vector<1x4x4xbf16>
    %188 = vector.shape_cast %187 : vector<1x4x4xbf16> to vector<4x4xbf16>
    %189 = arith.truncf %186 : vector<4x256xf32> to vector<4x256xbf16>
    %cst_111 = arith.constant dense<0.000000e+00> : vector<4x256xf32>
    %190 = tpu.matmul %188, %189, %cst_111 {dimension_numbers = #tpu.dot_dimension_numbers<[1], [0], [0], [1], [0, 0, 1, 1], [], []>} : vector<4x4xbf16>, vector<4x256xbf16>, vector<4x256xf32> -> vector<4x256xf32>
    %191 = arith.addf %183, %190 : vector<4x256xf32>
    %c0_112 = arith.constant 0 : index
    %c0_113 = arith.constant 0 : index
    %192 = vector.load %arg5[%c0_112, %c0_113] : memref<4x1xf32, #tpu.memory_space<vmem>>, vector<4x1xf32>
    %193 = vector.broadcast %192 : vector<4x1xf32> to vector<4x256xf32>
    %194 = arith.addf %191, %193 : vector<4x256xf32>
    %cst_114 = arith.constant dense<0.000000e+00> : vector<4xf32>
    %195 = vector.multi_reduction <add>, %194, %cst_114 [1] : vector<4x256xf32> to vector<4xf32>
    %196 = vector.shape_cast %195 : vector<4xf32> to vector<4x1xf32>
    %197 = arith.mulf %194, %194 : vector<4x256xf32>
    %cst_115 = arith.constant dense<0.000000e+00> : vector<4xf32>
    %198 = vector.multi_reduction <add>, %197, %cst_115 [1] : vector<4x256xf32> to vector<4xf32>
    %199 = vector.shape_cast %198 : vector<4xf32> to vector<4x1xf32>
    %cst_116 = arith.constant 3.906250e-03 : f32
    %200 = vector.broadcast %cst_116 : f32 to vector<4x1xf32>
    %201 = arith.mulf %196, %200 : vector<4x1xf32>
    %cst_117 = arith.constant 3.906250e-03 : f32
    %202 = vector.broadcast %cst_117 : f32 to vector<4x1xf32>
    %203 = arith.mulf %199, %202 : vector<4x1xf32>
    %204 = arith.mulf %201, %201 : vector<4x1xf32>
    %205 = arith.subf %203, %204 : vector<4x1xf32>
    %cst_118 = arith.constant 0.000000e+00 : f32
    %206 = vector.broadcast %cst_118 : f32 to vector<4x1xf32>
    %207 = arith.maximumf %205, %206 : vector<4x1xf32>
    %208 = vector.broadcast %201 : vector<4x1xf32> to vector<4x256xf32>
    %209 = arith.subf %194, %208 : vector<4x256xf32>
    %cst_119 = arith.constant 9.99999974E-6 : f32
    %210 = vector.broadcast %cst_119 : f32 to vector<4x1xf32>
    %211 = arith.addf %207, %210 : vector<4x1xf32>
    %212 = math.rsqrt %211 : vector<4x1xf32>
    %213 = vector.broadcast %212 : vector<4x1xf32> to vector<4x256xf32>
    %214 = arith.mulf %209, %213 : vector<4x256xf32>
    %215 = arith.addf %1, %214 : vector<4x256xf32>
    %c0_120 = arith.constant 0 : index
    %c0_121 = arith.constant 0 : index
    %c0_122 = arith.constant 0 : index
    %216 = vector.load %arg6[%c0_120, %c0_121, %c0_122] : memref<1x4x256xf32, #tpu.memory_space<vmem>>, vector<1x4x256xf32>
    %217 = vector.shape_cast %216 : vector<1x4x256xf32> to vector<4x256xf32>
    %218 = vector.shape_cast %215 : vector<4x256xf32> to vector<1x4x256xf32>
    tpu.vector_store %arg6[%c0_120, %c0_121, %c0_122], %218 {strides = array<i32>} : memref<1x4x256xf32, #tpu.memory_space<vmem>>, vector<1x4x256xf32>,
    return
  }
  func.func @transform_0(%arg0: i32) -> (i32, i32, i32) {
    %c0_i32 = arith.constant 0 : i32
    %c0_i32_0 = arith.constant 0 : i32
    %c0_i32_1 = arith.constant 0 : i32
    return %arg0, %c0_i32, %c0_i32_0 : i32, i32, i32
  }
  func.func @transform_1(%arg0: i32) -> (i32, i32, i32) {
    %c0_i32 = arith.constant 0 : i32
    %c0_i32_0 = arith.constant 0 : i32
    %c0_i32_1 = arith.constant 0 : i32
    %c0_i32_2 = arith.constant 0 : i32
    return %c0_i32, %c0_i32_0, %c0_i32_1 : i32, i32, i32
  }
  func.func @transform_2(%arg0: i32) -> (i32, i32) {
    %c0_i32 = arith.constant 0 : i32
    %c0_i32_0 = arith.constant 0 : i32
    %c0_i32_1 = arith.constant 0 : i32
    return %c0_i32, %c0_i32_0 : i32, i32
  }
  func.func @transform_3(%arg0: i32) -> (i32, i32, i32) {
    %c0_i32 = arith.constant 0 : i32
    %c0_i32_0 = arith.constant 0 : i32
    %c0_i32_1 = arith.constant 0 : i32
    %c0_i32_2 = arith.constant 0 : i32
    return %c0_i32, %c0_i32_0, %c0_i32_1 : i32, i32, i32
  }
  func.func @transform_4(%arg0: i32) -> (i32, i32) {
    %c0_i32 = arith.constant 0 : i32
    %c0_i32_0 = arith.constant 0 : i32
    %c0_i32_1 = arith.constant 0 : i32
    return %c0_i32, %c0_i32_0 : i32, i32
  }
  func.func @transform_5(%arg0: i32) -> (i32, i32, i32) {
    %c0_i32 = arith.constant 0 : i32
    %c0_i32_0 = arith.constant 0 : i32
    %c0_i32_1 = arith.constant 0 : i32
    return %arg0, %c0_i32, %c0_i32_0 : i32, i32, i32
  }
}

</mosaic_0001>

<bundles_post_ra>
// kernel: resnet_block.1
= control target key start
LH: loop header
LB: loop body
LE: loop exit
PB: predicated region body
PF: predicated region fallthrough
CT: control target
= control target key end

     0   :  { %s1501_s18 = smov 0   ;;  %s1870_s0 = inlined_call_operand.vmem [shape: f32[2,4,256], index: 0, kind: input, shape index: {}]   ;;  %s1871_s1 = inlined_call_operand.vmem [shape: bf16[9,4,4], index: 1, kind: input, shape index: {}]   ;;  %s1872_s2 = inlined_call_operand.vmem [shape: f32[4,1], index: 2, kind: input, shape index: {}]   ;;  %s1873_s3 = inlined_call_operand.vmem [shape: bf16[9,4,4], index: 3, kind: input, shape index: {}]   ;;  %s1874_s4 = inlined_call_operand.vmem [shape: f32[4,1], index: 4, kind: input, shape index: {}]   ;;  %s1875_s5 = inlined_call_operand.vmem [shape: f32[2,4,256], index: 5, kind: output, shape index: {}]  }
   0x1 LB: > { %s1294_s19 = sadd.s32 4294967295, %s1464_s18   ;;  %p1298_p0 = scmp.ge.s32.totalorder %s1464_s18, 1  ;;  %s1464_s18 = sphi %s1501_s18, %s15_s18  }
   0x2   : > { %p187_p1 = scmp.lt.s32.totalorder %s1464_s18, 3 }
   0x4   : > { %p188_p2 = pnand %p1298_p0, %p187_p1 }
   0x5   : > { %p215_p3 = scmp.lt.s32.totalorder (!%p188_p2), %s1294_s19, 1  ;;  %s1466_s24 = smov (!%p188_p2), 16  }
   0x6   : > { %191 = sbr.rel (%p188_p2) target bundleno = 1181 (0x49d), region = 40  ;;  %s1467_s25 = smov (!%p188_p2), 112  }
   0x7   : > { %s1468_s26 = smov (!%p188_p2), 1   ;;  %s1469_s27 = smov (!%p188_p2), 127  }
   0xb   : > { %s1885_s19 = smov (!%p215_p3, %s1294_s19), 1  ;;  %v227_v7 = vlaneseq  ;;  %vm315_vm1 = vcmask 1041408   ;;  %v1303_v34 = vld [vmem:[%s1871_s1 + $0x2] sm:$0x3]  ;;  %vm311_vm4 = vcmask 31744   ;;  %vm729_vm11 = vcmask 1043456  }
   0xc   : > { %s1357_s20 = sshll.u32 %s1885_s19, 3 }
   0xd   : > { %s219_s23 = scalar_lea.vmem %s1870_s0, %s1357_s20  ;;  %v1524_v8 = vand.u32 127, %v227_v7 }
   0xe   : > { %v1517_v0 = vld [vmem:[%s219_s23] sm:$0xff] }
   0xf   : > { %263 = vst [vmem:[#allocation1] ss:$2 sm:$0xff] %v1517_v0  ;;  %vm254_vm0 = vcmp.lt.s32.totalorder %v1524_v8, 16  ;;  %v1532_v17 = vadd.s32 128, %v1524_v8  ;;  %vm283_vm2 = vcmp.lt.s32.totalorder %v1524_v8, 112  ;;  %v234_v42 = vand.u32 15, %v1524_v8 }
  0x10   : > { %vm292_vm5 = vcmp.lt.s32.totalorder %v1524_v8, 1  ;;  %vm299_vm6 = vcmp.lt.s32.totalorder %v1524_v8, 127 }
  0x11   : > { %vm257_vm3 = vcmp.ge.s32.totalorder %v1532_v17, 240  ;;  %v241_v41 = vand.u32 15, %v1532_v17  ;;  %vm1578_vm7 = vcmp.eq.s32.totalorder %v234_v42, 0  ;;  %vm1590_vm9 = vcmp.eq.s32.totalorder %v234_v42, 15  ;;  %v1192_v17 = vld [vmem:[%s1874_s4] sm:$0xf] }
  0x13   : > { %vm1582_vm8 = vcmp.eq.s32.totalorder %v241_v41, 0  ;;  %vm1594_vm10 = vcmp.eq.s32.totalorder %v241_v41, 15 }
  0x16   : > { %v264_v1 = vld.sshfl [vmem:[#allocation1] sm:$0xff pattern:$0x75316420]  ;;  %v265_v2 = vld.sshfl [vmem:[#allocation1 + $0x8] sm:$0xff pattern:$0x75316420] }
  0x17   : > { %v1372_v3 = vpack.i.bf16 %v265_v2, %v264_v1  ;;  %274 = vst [vmem:[#allocation1] ss:$2 sm:$0xff] %v1517_v0 }
  0x19   : > { %1373 = vrot.lane.b32.xlu0 %v1372_v3, %s1466_s24 }
  0x1e   : > { %v275_v4 = vld.sshfl [vmem:[#allocation1] sm:$0xff pattern:$0x75316420]  ;;  %v276_v5 = vld.sshfl [vmem:[#allocation1 + $0x8] sm:$0xff pattern:$0x75316420] }
  0x1f   : > { %v1377_v6 = vpack.i.bf16 %v276_v5, %v275_v4  ;;  %426 = vst [vmem:[#allocation1] ss:$2 sm:$0xff] %v1517_v0 }
  0x21   : > { %1378 = vrot.lane.b32.xlu0 %v1377_v6, %s1467_s25 }
  0x26   : > { %v427_v9 = vld.sshfl [vmem:[#allocation1] sm:$0xff pattern:$0x75316420]  ;;  %v428_v10 = vld.sshfl [vmem:[#allocation1 + $0x8] sm:$0xff pattern:$0x75316420] }
  0x27   : > { %v1392_v12 = vpack.i.bf16 %v428_v10, %v427_v9  ;;  %437 = vst [vmem:[#allocation1] ss:$2 sm:$0xff] %v1517_v0 }
  0x29   : > { %1393 = vrot.lane.b32.xlu2 %v1392_v12, %s1468_s26 }
  0x2e   : > { %v438_v19 = vld.sshfl [vmem:[#allocation1] sm:$0xff pattern:$0x75316420]  ;;  %v439_v20 = vld.sshfl [vmem:[#allocation1 + $0x8] sm:$0xff pattern:$0x75316420] }
  0x2f   : > { %v1397_v22 = vpack.i.bf16 %v439_v20, %v438_v19  ;;  %493 = vst [vmem:[#allocation1] ss:$2 sm:$0xff] %v1517_v0 }
  0x31   : > { %1398 = vrot.lane.b32.xlu2 %v1397_v22, %s1469_s27 }
  0x36   : > { %v494_v54 = vld.sshfl [vmem:[#allocation1] sm:$0xff pattern:$0x75316420]  ;;  %v495_v55 = vld.sshfl [vmem:[#allocation1 + $0x8] sm:$0xff pattern:$0x75316420] }
  0x37   : > { %v498_v63 = vpack.c.bf16 %v494_v54, %v494_v54  ;;  %v499_v1 = vpack.c.bf16 %v495_v55, %v495_v55  ;;  %v1311_v54 = vld [vmem:[%s1871_s1 + $0x6] sm:$0x3] }
  0x83   : > { %v1394_v35 = vpop.permute.xlu2 %1393 }
  0x84   : > { %v1396_v37 = vunpack.i.h.bf16 %v1394_v35  ;;  %v1395_v38 = vunpack.i.l.bf16 %v1394_v35  ;;  %v1308_v35 = vld [vmem:[%s1871_s1 + $0x4] sm:$0x3] }
  0x86   : > { %v436_v44 = vsel %vm292_vm5, %v1396_v37, %v1395_v38  ;;  %v435_v46 = vsel %vm292_vm5, %v1395_v38, %v1396_v37  ;;  %v504_v37 = vsel %vm315_vm1, %v498_v63, 0  ;;  %v507_v38 = vsel %vm315_vm1, %v499_v1, 0  ;;  %v721_v1 = vld [vmem:[%s1872_s2] sm:$0xf] }
  0x8b   : > { %v1374_v11 = vpop.permute.xlu0 %1373  ;;  %v1399_v36 = vpop.permute.xlu2 %1398 }
  0x8c   : > { %v1376_v13 = vunpack.i.h.bf16 %v1374_v11  ;;  %v1375_v14 = vunpack.i.l.bf16 %v1374_v11  ;;  %v1401_v39 = vunpack.i.h.bf16 %v1399_v36  ;;  %v1400_v40 = vunpack.i.l.bf16 %v1399_v36 }
  0x8e   : > { %v272_v15 = vsel %vm254_vm0, %v1375_v14, %v1376_v13  ;;  %v273_v27 = vsel %vm254_vm0, %v1376_v13, %v1375_v14  ;;  %v446_v45 = vsel %vm299_vm6, %v1400_v40, %v1401_v39  ;;  %v447_v47 = vsel %vm299_vm6, %v1401_v39, %v1400_v40 }
  0x8f   : > { %v310_v16 = vpack.c.bf16 %v272_v15, %v272_v15  ;;  %v448_v50 = vsel %vm1578_vm7, %v446_v45, %v436_v44  ;;  %v449_v51 = vsel %vm1582_vm8, %v447_v47, %v435_v46  ;;  %v537_v4 = vsel %vm1590_vm9, %v436_v44, %v446_v45 }
  0x90   : > { %v452_v52 = vpack.c.bf16 %v448_v50, %v448_v50  ;;  %v453_v53 = vpack.c.bf16 %v449_v51, %v449_v51  ;;  %v538_v5 = vsel %vm1594_vm10, %v435_v46, %v447_v47 }
  0x91   : > { %v320_v18 = vsel %vm315_vm1, %v310_v16, 0 }
  0x92   : > { %342 = vmatpush.bf16.msra.mxu1 %v320_v18  ;;  %v458_v2 = vsel %vm315_vm1, %v452_v52, 0  ;;  %v461_v3 = vsel %vm315_vm1, %v453_v53, 0 }
  0x93   : > { %v1379_v21 = vpop.permute.xlu0 %1378 }
  0x94   : > { %v1381_v23 = vunpack.i.h.bf16 %v1379_v21  ;;  %v1380_v24 = vunpack.i.l.bf16 %v1379_v21 }
  0x95   : > { %1305 = vmatmul.msk.bf16.vlgmr.msra.gmra.mxu1 %vm311_vm4, %v1303_v34 }
  0x96   : > { %v1541_v25 = vsel %vm283_vm2, %v1380_v24, %v1381_v23  ;;  %v285_v26 = vsel %vm283_vm2, %v1381_v23, %v1380_v24  ;;  %v541_v23 = vpack.c.bf16 %v537_v4, %v537_v4  ;;  %v542_v24 = vpack.c.bf16 %v538_v5, %v538_v5  ;;  %v1320_v4 = vld [vmem:[%s1871_s1 + $0xc] sm:$0x3]  ;;  %v1323_v5 = vld [vmem:[%s1871_s1 + $0xe] sm:$0x3] }
  0x97   : > { %v1549_v28 = vsel %vm257_vm3, %v272_v15, %v285_v26  ;;  %v286_v29 = vsel %vm254_vm0, %v1541_v25, %v273_v27  ;;  %v639_v55 = vpack.c.bf16 %v1541_v25, %v1541_v25 }
  0x98   : > { %v1402_v30 = vpack.i.bf16 %v1549_v28, %v1541_v25  ;;  %v1382_v31 = vpack.i.bf16 %v272_v15, %v286_v29  ;;  %v309_v32 = vpack.c.bf16 %v286_v29, %v286_v29  ;;  %v547_v39 = vsel %vm315_vm1, %v541_v23, 0 }
  0x9a   : > { %1403 = vrot.lane.b32.xlu0 %v1402_v30, %s1468_s26  ;;  %1383 = vrot.lane.b32.xlu1 %v1382_v31, %s1468_s26  ;;  %v317_v33 = vsel %vm315_vm1, %v309_v32, 0  ;;  %v304_v32 = vld [vmem:[%s1871_s1] sm:$0x3] }
  0x9b   : > { %329 = vmatpush.bf16.msra.mxu0 %v317_v33 }
  0x9e   : > { %1304 = vmatmul.msk.bf16.vlgmr.msra.gmra.mxu0 %vm311_vm4, %v1303_v34 }
  0xa2   : > { %1388 = vrot.lane.b32.xlu1 %v1382_v31, %s1469_s27 }
  0xaa   : > { %1408 = vrot.lane.b32.xlu1 %v1402_v30, %s1469_s27 }
 0x10c   : > { %v1384_v43 = vpop.permute.xlu1 %1383  ;;  %v1404_v6 = vpop.permute.xlu0 %1403 }
 0x10d   : > { %v1386_v56 = vunpack.i.h.bf16 %v1384_v43  ;;  %v1385_v57 = vunpack.i.l.bf16 %v1384_v43  ;;  %v1406_v21 = vunpack.i.h.bf16 %v1404_v6  ;;  %v1405_v22 = vunpack.i.l.bf16 %v1404_v6  ;;  %v1326_v6 = vld [vmem:[%s1871_s1 + $0x10] sm:$0x3] }
 0x10e   : > { %v550_v43 = vsel %vm315_vm1, %v542_v24, 0 }
 0x10f   : > { %v294_v7 = vsel %vm292_vm5, %v1386_v56, %v1385_v57  ;;  %v293_v10 = vsel %vm292_vm5, %v1385_v57, %v1386_v56  ;;  %v586_v36 = vsel %vm292_vm5, %v1405_v22, %v1406_v21  ;;  %v587_v40 = vsel %vm292_vm5, %v1406_v21, %v1405_v22  ;;  %v1314_v57 = vld [vmem:[%s1871_s1 + $0x8] sm:$0x3] }
 0x110   : > { %v640_v56 = vpack.c.bf16 %v1549_v28, %v1549_v28 }
 0x112   : > { %v648_v25 = vsel %vm315_vm1, %v640_v56, 0 }
 0x114   : > { %v1389_v58 = vpop.permute.xlu1 %1388 }
 0x115   : > { %v1391_v61 = vunpack.i.h.bf16 %v1389_v58  ;;  %v1390_v62 = vunpack.i.l.bf16 %v1389_v58 }
 0x117   : > { %v300_v9 = vsel %vm299_vm6, %v1390_v62, %v1391_v61  ;;  %v301_v11 = vsel %vm299_vm6, %v1391_v61, %v1390_v62  ;;  %v645_v62 = vsel %vm315_vm1, %v639_v55, 0 }
 0x118   : > { %v302_v12 = vsel %vm1578_vm7, %v300_v9, %v294_v7  ;;  %v303_v13 = vsel %vm1582_vm8, %v301_v11, %v293_v10  ;;  %v383_v14 = vsel %vm1590_vm9, %v294_v7, %v300_v9  ;;  %v384_v15 = vsel %vm1594_vm10, %v293_v10, %v301_v11  ;;  %v344_v9 = vpop.f32.mrf.mxu1 }
 0x119   : > { %v305_v16 = vpack.c.bf16 %v302_v12, %v302_v12  ;;  %v306_v18 = vpack.c.bf16 %v303_v13, %v303_v13  ;;  %v387_v19 = vpack.c.bf16 %v383_v14, %v383_v14  ;;  %v388_v20 = vpack.c.bf16 %v384_v15, %v384_v15 }
 0x11b   : > { %v352_v26 = vsel %vm315_vm1, %v305_v16, 0  ;;  %v355_v27 = vsel %vm315_vm1, %v306_v18, 0  ;;  %v393_v29 = vsel %vm315_vm1, %v387_v19, 0  ;;  %v396_v30 = vsel %vm315_vm1, %v388_v20, 0  ;;  %v331_v7 = vpop.f32.mrf.mxu0 }
 0x11c   : > { %v1409_v31 = vpop.permute.xlu1 %1408  ;;  %364 = vmatpush.bf16.msra.mxu2 %v352_v26  ;;  %377 = vmatpush.bf16.msra.mxu3 %v355_v27 }
 0x11d   : > { %v1411_v33 = vunpack.i.h.bf16 %v1409_v31  ;;  %v1410_v34 = vunpack.i.l.bf16 %v1409_v31  ;;  %405 = vmatpush.bf16.msrb.mxu0 %v393_v29  ;;  %418 = vmatpush.bf16.msrb.mxu1 %v396_v30 }
 0x11f   : > { %v592_v41 = vsel %vm299_vm6, %v1410_v34, %v1411_v33  ;;  %v593_v42 = vsel %vm299_vm6, %v1411_v33, %v1410_v34  ;;  %1306 = vmatmul.msk.bf16.vlgmr.msra.gmra.mxu2 %vm311_vm4, %v304_v32  ;;  %1307 = vmatmul.msk.bf16.vlgmr.msra.gmra.mxu3 %vm311_vm4, %v304_v32 }
 0x120   : > { %470 = vmatpush.bf16.msrb.mxu2 %v458_v2  ;;  %483 = vmatpush.bf16.msrb.mxu3 %v461_v3  ;;  %v594_v44 = vsel %vm1578_vm7, %v592_v41, %v587_v40  ;;  %v595_v45 = vsel %vm1582_vm8, %v593_v42, %v586_v36  ;;  %v678_v52 = vsel %vm1590_vm9, %v587_v40, %v592_v41  ;;  %v1470_v2 = vmov 0   ;;  %v1317_v3 = vld [vmem:[%s1871_s1 + $0xa] sm:$0x3]  ;;  %v346_v11 = vpop.f32.mrf.mxu1 }
 0x121   : > { %1309 = vmatmul.msk.bf16.vlgmr.msrb.gmra.mxu0 %vm311_vm4, %v1308_v35  ;;  %1310 = vmatmul.msk.bf16.vlgmr.msrb.gmra.mxu1 %vm311_vm4, %v1308_v35  ;;  %v598_v46 = vpack.c.bf16 %v594_v44, %v594_v44  ;;  %v599_v47 = vpack.c.bf16 %v595_v45, %v595_v45  ;;  %v679_v53 = vsel %vm1594_vm10, %v586_v36, %v593_v42 }
 0x122   : > { %516 = vmatpush.bf16.msra.mxu0 %v504_v37  ;;  %529 = vmatpush.bf16.msra.mxu1 %v507_v38  ;;  %v682_v58 = vpack.c.bf16 %v678_v52, %v678_v52  ;;  %v683_v61 = vpack.c.bf16 %v679_v53, %v679_v53 }
 0x123   : > { %v604_v50 = vsel %vm315_vm1, %v598_v46, 0  ;;  %v607_v51 = vsel %vm315_vm1, %v599_v47, 0  ;;  %1412 = vset.pattern.permute.xlu2 %v1470_v2  ;;  %1453 = vset.pattern.permute.xlu0 %v1470_v2  ;;  %v333_v10 = vpop.f32.mrf.mxu0 }
 0x124   : > { %559 = vmatpush.bf16.msra.mxu2 %v547_v39  ;;  %572 = vmatpush.bf16.msra.mxu3 %v550_v43  ;;  %v688_v28 = vsel %vm315_vm1, %v682_v58, 0  ;;  %v691_v63 = vsel %vm315_vm1, %v683_v61, 0 }
 0x125   : > { %724 = vperm.xlu2 %1412, %v721_v1  }
 0x126   : > { %616 = vmatpush.bf16.msrb.mxu0 %v604_v50  ;;  %629 = vmatpush.bf16.msrb.mxu1 %v607_v51 }
 0x12f   : > { %1312 = vmatmul.msk.bf16.vlgmr.msrb.gmra.mxu2 %vm311_vm4, %v1311_v54  ;;  %1313 = vmatmul.msk.bf16.vlgmr.msrb.gmra.mxu3 %vm311_vm4, %v1311_v54 }
 0x130   : > { %657 = vmatpush.bf16.msrb.mxu2 %v645_v62  ;;  %670 = vmatpush.bf16.msrb.mxu3 %v648_v25 }
 0x131   : > { %1315 = vmatmul.msk.bf16.vlgmr.msra.gmra.mxu0 %vm311_vm4, %v1314_v57  ;;  %1316 = vmatmul.msk.bf16.vlgmr.msra.gmra.mxu1 %vm311_vm4, %v1314_v57 }
 0x132   : > { %700 = vmatpush.bf16.msra.mxu0 %v688_v28  ;;  %713 = vmatpush.bf16.msra.mxu1 %v691_v63 }
 0x13f   : > { %1318 = vmatmul.msk.bf16.vlgmr.msra.gmra.mxu2 %vm311_vm4, %v1317_v3  ;;  %1319 = vmatmul.msk.bf16.vlgmr.msra.gmra.mxu3 %vm311_vm4, %v1317_v3 }
 0x141   : > { %1321 = vmatmul.msk.bf16.vlgmr.msrb.gmra.mxu0 %vm311_vm4, %v1320_v4  ;;  %1322 = vmatmul.msk.bf16.vlgmr.msrb.gmra.mxu1 %vm311_vm4, %v1320_v4 }
 0x14f   : > { %1324 = vmatmul.msk.bf16.vlgmr.msrb.gmra.mxu2 %vm311_vm4, %v1323_v5  ;;  %1325 = vmatmul.msk.bf16.vlgmr.msrb.gmra.mxu3 %vm311_vm4, %v1323_v5 }
 0x151   : > { %1327 = vmatmul.msk.bf16.vlgmr.msra.gmra.mxu0 %vm311_vm4, %v1326_v6  ;;  %1328 = vmatmul.msk.bf16.vlgmr.msra.gmra.mxu1 %vm311_vm4, %v1326_v6 }
 0x17f   : > { %v725_v61 = vpop.permute.xlu2 %724 }
 0x19e   : > { %v407_v12 = vpop.f32.mrf.mxu0  ;;  %v420_v13 = vpop.f32.mrf.mxu1 }
 0x1a2   : > { %v366_v14 = vpop.f32.mrf.mxu2  ;;  %v379_v15 = vpop.f32.mrf.mxu3 }
 0x1a3   : > { %v367_v33 = vadd.f32 %v366_v14, %v331_v7  ;;  %v380_v34 = vadd.f32 %v379_v15, %v344_v9 }
 0x1a5   : > { %v424_v37 = vadd.f32 %v407_v12, %v367_v33  ;;  %v425_v38 = vadd.f32 %v420_v13, %v380_v34 }
 0x1a6   : > { %v409_v16 = vpop.f32.mrf.mxu0  ;;  %v422_v18 = vpop.f32.mrf.mxu1 }
 0x1aa   : > { %v368_v19 = vpop.f32.mrf.mxu2  ;;  %v381_v20 = vpop.f32.mrf.mxu3 }
 0x1ae   : > { %v518_v21 = vpop.f32.mrf.mxu0  ;;  %v531_v22 = vpop.f32.mrf.mxu1 }
 0x1b2   : > { %v472_v23 = vpop.f32.mrf.mxu2  ;;  %v485_v24 = vpop.f32.mrf.mxu3 }
 0x1b3   : > { %v489_v41 = vadd.f32 %v472_v23, %v424_v37  ;;  %v490_v42 = vadd.f32 %v485_v24, %v425_v38 }
 0x1b5   : > { %v535_v45 = vadd.f32 %v518_v21, %v489_v41  ;;  %v536_v46 = vadd.f32 %v531_v22, %v490_v42 }
 0x1b6   : > { %v520_v26 = vpop.f32.mrf.mxu0  ;;  %v533_v27 = vpop.f32.mrf.mxu1 }
 0x1ba   : > { %v474_v29 = vpop.f32.mrf.mxu2  ;;  %v487_v30 = vpop.f32.mrf.mxu3 }
 0x1be   : > { %v618_v31 = vpop.f32.mrf.mxu0  ;;  %v631_v32 = vpop.f32.mrf.mxu1 }
 0x1c2   : > { %v561_v35 = vpop.f32.mrf.mxu2  ;;  %v574_v36 = vpop.f32.mrf.mxu3 }
 0x1c3   : > { %v578_v47 = vadd.f32 %v561_v35, %v535_v45  ;;  %v579_v50 = vadd.f32 %v574_v36, %v536_v46 }
 0x1c5   : > { %v635_v53 = vadd.f32 %v618_v31, %v578_v47  ;;  %v636_v54 = vadd.f32 %v631_v32, %v579_v50 }
 0x1c6   : > { %v620_v39 = vpop.f32.mrf.mxu0  ;;  %v633_v40 = vpop.f32.mrf.mxu1 }
 0x1ca   : > { %v563_v43 = vpop.f32.mrf.mxu2  ;;  %v576_v44 = vpop.f32.mrf.mxu3 }
 0x1ce   : > { %v702_v51 = vpop.f32.mrf.mxu0  ;;  %v715_v52 = vpop.f32.mrf.mxu1 }
 0x1d2   : > { %v659_v55 = vpop.f32.mrf.mxu2  ;;  %v672_v56 = vpop.f32.mrf.mxu3 }
 0x1d3   : > { %v676_v57 = vadd.f32 %v659_v55, %v635_v53  ;;  %v677_v58 = vadd.f32 %v672_v56, %v636_v54 }
 0x1d5   : > { %v719_v62 = vadd.f32 %v702_v51, %v676_v57  ;;  %v720_v25 = vadd.f32 %v715_v52, %v677_v58 }
 0x1d6   : > { %v704_v28 = vpop.f32.mrf.mxu0  ;;  %v717_v63 = vpop.f32.mrf.mxu1 }
 0x1d7   : > { %v727_v1 = vadd.f32 %v725_v61, %v719_v62  ;;  %v728_v2 = vadd.f32 %v725_v61, %v720_v25  ;;  %v1329_v61 = vld [vmem:[%s1873_s3 + $0x2] sm:$0x3] }
 0x1d9   : > { %v730_v3 = vsel %vm729_vm11, %v727_v1, 0.0  ;;  %v731_v4 = vsel %vm729_vm11, %v728_v2, 0.0  ;;  %v735_v5 = vmul.f32 %v727_v1, %v727_v1  ;;  %v736_v6 = vmul.f32 %v728_v2, %v728_v2 }
 0x1da   : > { %v661_v7 = vpop.f32.mrf.mxu2  ;;  %v674_v9 = vpop.f32.mrf.mxu3  ;;  %v732_v10 = vadd.f32 %v731_v4, %v730_v3 }
 0x1db   : > { %v737_v11 = vsel %vm729_vm11, %v735_v5, 0.0  ;;  %v738_v12 = vsel %vm729_vm11, %v736_v6, 0.0 }
 0x1dc   : > { %733 = vadd.xlane.f32.xlu0 %v732_v10  ;;  %v739_v13 = vadd.f32 %v738_v12, %v737_v11 }
 0x1de   : > { %740 = vadd.xlane.f32.xlu1 %v739_v13 }
 0x24f   : > { %v734_v14 = vpop.xlane.xlu0 %733 }
 0x250   : > { %v742_v15 = vmul.f32 0.00390625, %v734_v14 }
 0x251   : > { %v741_v16 = vpop.xlane.xlu1 %740 }
 0x252   : > { %v743_v18 = vmul.f32 0.00390625, %v741_v16  ;;  %v744_v19 = vmul.f32 %v742_v15, %v742_v15  ;;  %v747_v31 = vsub.f32 %v727_v1, %v742_v15  ;;  %v748_v32 = vsub.f32 %v728_v2, %v742_v15 }
 0x254   : > { %v745_v20 = vsub.f32 %v743_v18, %v744_v19 }
 0x256   : > { %v746_v21 = vmax.f32 %v745_v20, 0.0 }
 0x258   : > { %v749_v22 = vadd.f32 1e-05, %v746_v21 }
 0x25a   : > { %1454 = vrsqrt.f32 %v749_v22  ;;  %vm756_vm13 = vweird.f32 %v749_v22 }
 0x260   : > { %v1455_v23 = vpop.eup %1454 }
 0x261   : > { %v751_v24 = vmul.f32 %v1455_v23, %v749_v22  ;;  %vm757_vm12 = vweird.f32 %v1455_v23 }
 0x262   : > { %vm758_vm14 = vmor %vm756_vm13, %vm757_vm12 }
 0x263   : > { %v752_v26 = vmul.f32 %v1455_v23, %v751_v24  ;;  %v792_v24 = vld [vmem:[%s1873_s3] sm:$0x3] }
 0x265   : > { %v753_v27 = vmul.f32 0.5, %v752_v26 }
 0x267   : > { %v754_v29 = vsub.f32 1.5, %v753_v27 }
 0x269   : > { %v755_v30 = vmul.f32 %v1455_v23, %v754_v29  ;;  %v1334_v29 = vld [vmem:[%s1873_s3 + $0x4] sm:$0x3] }
 0x26b   : > { %v759_v33 = vsel %vm758_vm14, %v1455_v23, %v755_v30 }
 0x26c   : > { %v760_v34 = vmul.f32 %v759_v33, %v747_v31  ;;  %v761_v35 = vmul.f32 %v759_v33, %v748_v32 }
 0x26e   : > { %v1701_v36 = vmax.f32 %v760_v34, 0.0  ;;  %v1703_v37 = vmax.f32 %v761_v35, 0.0 }
 0x270   : > { %v1413_v38 = vpack.i.bf16 %v1703_v37, %v1701_v36  ;;  %v969_v3 = vpack.c.bf16 %v1701_v36, %v1701_v36  ;;  %v970_v4 = vpack.c.bf16 %v1703_v37, %v1703_v37 }
 0x272   : > { %1414 = vrot.lane.b32.xlu2 %v1413_v38, %s1466_s24  ;;  %v975_v26 = vsel %vm315_vm1, %v969_v3, 0  ;;  %v978_v27 = vsel %vm315_vm1, %v970_v4, 0  ;;  %s224_s24 = scalar_lea.vmem %s1875_s5, %s1357_s20 }
 0x27a   : > { %1419 = vrot.lane.b32.xlu2 %v1413_v38, %s1467_s25 }
 0x2cc   : > { %v1415_v39 = vpop.permute.xlu2 %1414 }
 0x2cd   : > { %v1417_v40 = vunpack.i.h.bf16 %v1415_v39  ;;  %v1416_v41 = vunpack.i.l.bf16 %v1415_v39 }
 0x2cf   : > { %v768_v42 = vsel %vm254_vm0, %v1416_v41, %v1417_v40  ;;  %v769_v50 = vsel %vm254_vm0, %v1417_v40, %v1416_v41 }
 0x2d0   : > { %v798_v43 = vpack.c.bf16 %v768_v42, %v768_v42 }
 0x2d2   : > { %v806_v44 = vsel %vm315_vm1, %v798_v43, 0 }
 0x2d3   : > { %828 = vmatpush.bf16.msra.mxu3 %v806_v44 }
 0x2d4   : > { %v1420_v45 = vpop.permute.xlu2 %1419 }
 0x2d5   : > { %v1422_v46 = vunpack.i.h.bf16 %v1420_v45  ;;  %v1421_v47 = vunpack.i.l.bf16 %v1420_v45 }
 0x2d6   : > { %1331 = vmatmul.msk.bf16.vlgmr.msra.gmra.mxu3 %vm311_vm4, %v1329_v61 }
 0x2d7   : > { %v1716_v51 = vsel %vm283_vm2, %v1421_v47, %v1422_v46  ;;  %v775_v52 = vsel %vm283_vm2, %v1422_v46, %v1421_v47 }
 0x2d8   : > { %v776_v53 = vsel %vm254_vm0, %v1716_v51, %v769_v50  ;;  %v1725_v54 = vsel %vm257_vm3, %v768_v42, %v775_v52  ;;  %v1110_v34 = vpack.c.bf16 %v1716_v51, %v1716_v51 }
 0x2d9   : > { %v1423_v55 = vpack.i.bf16 %v768_v42, %v776_v53  ;;  %v1448_v56 = vpack.i.bf16 %v1725_v54, %v1716_v51  ;;  %v797_v57 = vpack.c.bf16 %v776_v53, %v776_v53  ;;  %v1111_v35 = vpack.c.bf16 %v1725_v54, %v1725_v54 }
 0x2db   : > { %1424 = vrot.lane.b32.xlu2 %v1423_v55, %s1468_s26  ;;  %1449 = vrot.lane.b32.xlu1 %v1448_v56, %s1469_s27  ;;  %v803_v58 = vsel %vm315_vm1, %v797_v57, 0 }
 0x2dc   : > { %1444 = vrot.lane.b32.xlu0 %v1448_v56, %s1468_s26  ;;  %815 = vmatpush.bf16.msra.mxu2 %v803_v58 }
 0x2df   : > { %1330 = vmatmul.msk.bf16.vlgmr.msra.gmra.mxu2 %vm311_vm4, %v1329_v61 }
 0x2e3   : > { %1429 = vrot.lane.b32.xlu2 %v1423_v55, %s1469_s27 }
 0x2eb   : > { %1434 = vrot.lane.b32.xlu2 %v1413_v38, %s1468_s26 }
 0x2f3   : > { %1439 = vrot.lane.b32.xlu2 %v1413_v38, %s1469_s27 }
 0x2fb   : > { %1195 = vperm.xlu2 %1412, %v1192_v17  }
 0x335   : > { %v1425_v62 = vpop.permute.xlu2 %1424 }
 0x336   : > { %v1427_v25 = vunpack.i.h.bf16 %v1425_v62  ;;  %v1426_v28 = vunpack.i.l.bf16 %v1425_v62 }
 0x338   : > { %v782_v5 = vsel %vm292_vm5, %v1426_v28, %v1427_v25  ;;  %v783_v6 = vsel %vm292_vm5, %v1427_v25, %v1426_v28 }
 0x33d   : > { %v1430_v63 = vpop.permute.xlu2 %1429 }
 0x33e   : > { %v1432_v1 = vunpack.i.h.bf16 %v1430_v63  ;;  %v1431_v2 = vunpack.i.l.bf16 %v1430_v63 }
 0x340   : > { %v788_v7 = vsel %vm299_vm6, %v1431_v2, %v1432_v1  ;;  %v789_v9 = vsel %vm299_vm6, %v1432_v1, %v1431_v2  ;;  %v1337_v2 = vld [vmem:[%s1873_s3 + $0x6] sm:$0x3] }
 0x341   : > { %v790_v10 = vsel %vm1578_vm7, %v788_v7, %v783_v6  ;;  %v791_v11 = vsel %vm1582_vm8, %v789_v9, %v782_v5  ;;  %v869_v12 = vsel %vm1590_vm9, %v783_v6, %v788_v7  ;;  %v870_v13 = vsel %vm1594_vm10, %v782_v5, %v789_v9  ;;  %v1340_v7 = vld [vmem:[%s1873_s3 + $0x8] sm:$0x3] }
 0x342   : > { %v793_v14 = vpack.c.bf16 %v790_v10, %v790_v10  ;;  %v794_v15 = vpack.c.bf16 %v791_v11, %v791_v11  ;;  %v873_v16 = vpack.c.bf16 %v869_v12, %v869_v12  ;;  %v874_v18 = vpack.c.bf16 %v870_v13, %v870_v13  ;;  %v1343_v13 = vld [vmem:[%s1873_s3 + $0xa] sm:$0x3] }
 0x343   : > { %v1116_v11 = vsel %vm315_vm1, %v1110_v34, 0  ;;  %v1119_v12 = vsel %vm315_vm1, %v1111_v35, 0 }
 0x344   : > { %v838_v19 = vsel %vm315_vm1, %v793_v14, 0  ;;  %v841_v20 = vsel %vm315_vm1, %v794_v15, 0  ;;  %v879_v21 = vsel %vm315_vm1, %v873_v16, 0  ;;  %v882_v22 = vsel %vm315_vm1, %v874_v18, 0  ;;  %v1346_v14 = vld [vmem:[%s1873_s3 + $0xc] sm:$0x3] }
 0x345   : > { %v1435_v23 = vpop.permute.xlu2 %1434  ;;  %850 = vmatpush.bf16.msrb.mxu0 %v838_v19  ;;  %863 = vmatpush.bf16.msrb.mxu1 %v841_v20  ;;  %v1349_v15 = vld [vmem:[%s1873_s3 + $0xe] sm:$0x3]  ;;  %v1352_v16 = vld [vmem:[%s1873_s3 + $0x10] sm:$0x3] }
 0x346   : > { %891 = vmatpush.bf16.msrb.mxu2 %v879_v21  ;;  %904 = vmatpush.bf16.msrb.mxu3 %v882_v22  ;;  %v1437_v30 = vunpack.i.h.bf16 %v1435_v23  ;;  %v1436_v31 = vunpack.i.l.bf16 %v1435_v23 }
 0x348   : > { %1332 = vmatmul.msk.bf16.vlgmr.msrb.gmra.mxu0 %vm311_vm4, %v792_v24  ;;  %1333 = vmatmul.msk.bf16.vlgmr.msrb.gmra.mxu1 %vm311_vm4, %v792_v24  ;;  %v916_v41 = vsel %vm292_vm5, %v1436_v31, %v1437_v30  ;;  %v917_v42 = vsel %vm292_vm5, %v1437_v30, %v1436_v31 }
 0x349   : > { %1335 = vmatmul.msk.bf16.vlgmr.msrb.gmra.mxu2 %vm311_vm4, %v1334_v29  ;;  %1336 = vmatmul.msk.bf16.vlgmr.msrb.gmra.mxu3 %vm311_vm4, %v1334_v29 }
 0x34a   : > { %987 = vmatpush.bf16.msra.mxu2 %v975_v26  ;;  %1000 = vmatpush.bf16.msra.mxu3 %v978_v27 }
 0x34d   : > { %v1440_v32 = vpop.permute.xlu2 %1439  ;;  %v1450_v33 = vpop.permute.xlu1 %1449 }
 0x34e   : > { %v1442_v36 = vunpack.i.h.bf16 %v1440_v32  ;;  %v1441_v37 = vunpack.i.l.bf16 %v1440_v32  ;;  %v1452_v38 = vunpack.i.h.bf16 %v1450_v33  ;;  %v1451_v39 = vunpack.i.l.bf16 %v1450_v33  ;;  %v1445_v40 = vpop.permute.xlu0 %1444 }
 0x34f   : > { %v1447_v43 = vunpack.i.h.bf16 %v1445_v40  ;;  %v1446_v44 = vunpack.i.l.bf16 %v1445_v40 }
 0x350   : > { %v922_v45 = vsel %vm299_vm6, %v1441_v37, %v1442_v36  ;;  %v923_v46 = vsel %vm299_vm6, %v1442_v36, %v1441_v37  ;;  %v1063_v47 = vsel %vm299_vm6, %v1451_v39, %v1452_v38  ;;  %v1064_v50 = vsel %vm299_vm6, %v1452_v38, %v1451_v39 }
 0x351   : > { %v1057_v51 = vsel %vm292_vm5, %v1446_v44, %v1447_v43  ;;  %v1058_v52 = vsel %vm292_vm5, %v1447_v43, %v1446_v44  ;;  %v924_v53 = vsel %vm1578_vm7, %v922_v45, %v917_v42  ;;  %v925_v54 = vsel %vm1582_vm8, %v923_v46, %v916_v41 }
 0x352   : > { %v928_v55 = vpack.c.bf16 %v924_v53, %v924_v53  ;;  %v929_v56 = vpack.c.bf16 %v925_v54, %v925_v54  ;;  %v1065_v57 = vsel %vm1578_vm7, %v1063_v47, %v1058_v52  ;;  %v1066_v58 = vsel %vm1582_vm8, %v1064_v50, %v1057_v51 }
 0x353   : > { %v1069_v17 = vpack.c.bf16 %v1065_v57, %v1065_v57  ;;  %v1070_v61 = vpack.c.bf16 %v1066_v58, %v1066_v58  ;;  %v1008_v8 = vsel %vm1590_vm9, %v917_v42, %v922_v45  ;;  %v1009_v62 = vsel %vm1594_vm10, %v916_v41, %v923_v46 }
 0x354   : > { %v934_v25 = vsel %vm315_vm1, %v928_v55, 0  ;;  %v937_v28 = vsel %vm315_vm1, %v929_v56, 0  ;;  %v1012_v63 = vpack.c.bf16 %v1008_v8, %v1008_v8  ;;  %v1013_v1 = vpack.c.bf16 %v1009_v62, %v1009_v62 }
 0x355   : > { %946 = vmatpush.bf16.msra.mxu0 %v934_v25  ;;  %959 = vmatpush.bf16.msra.mxu1 %v937_v28  ;;  %v1075_v48 = vsel %vm315_vm1, %v1069_v17, 0  ;;  %v1078_v49 = vsel %vm315_vm1, %v1070_v61, 0  ;;  %v1149_v3 = vsel %vm1590_vm9, %v1058_v52, %v1063_v47  ;;  %v1150_v4 = vsel %vm1594_vm10, %v1057_v51, %v1064_v50 }
 0x356   : > { %1087 = vmatpush.bf16.msrb.mxu2 %v1075_v48  ;;  %1100 = vmatpush.bf16.msrb.mxu3 %v1078_v49  ;;  %v1018_v5 = vsel %vm315_vm1, %v1012_v63, 0  ;;  %v1021_v6 = vsel %vm315_vm1, %v1013_v1, 0  ;;  %v1153_v9 = vpack.c.bf16 %v1149_v3, %v1149_v3  ;;  %v1154_v10 = vpack.c.bf16 %v1150_v4, %v1150_v4 }
 0x358   : > { %1338 = vmatmul.msk.bf16.vlgmr.msra.gmra.mxu0 %vm311_vm4, %v1337_v2  ;;  %1339 = vmatmul.msk.bf16.vlgmr.msra.gmra.mxu1 %vm311_vm4, %v1337_v2  ;;  %v1159_v59 = vsel %vm315_vm1, %v1153_v9, 0  ;;  %v1162_v60 = vsel %vm315_vm1, %v1154_v10, 0 }
 0x359   : > { %1030 = vmatpush.bf16.msrb.mxu0 %v1018_v5  ;;  %1043 = vmatpush.bf16.msrb.mxu1 %v1021_v6  ;;  %v830_v19 = vpop.f32.mrf.mxu3  ;;  %v1196_v5 = vpop.permute.xlu2 %1195 }
 0x35a   : > { %1341 = vmatmul.msk.bf16.vlgmr.msra.gmra.mxu2 %vm311_vm4, %v1340_v7  ;;  %1342 = vmatmul.msk.bf16.vlgmr.msra.gmra.mxu3 %vm311_vm4, %v1340_v7 }
 0x35b   : > { %1171 = vmatpush.bf16.msra.mxu2 %v1159_v59  ;;  %1184 = vmatpush.bf16.msra.mxu3 %v1162_v60 }
 0x35d   : > { %1128 = vmatpush.bf16.msra.mxu0 %v1116_v11  ;;  %1141 = vmatpush.bf16.msra.mxu1 %v1119_v12 }
 0x361   : > { %v832_v21 = vpop.f32.mrf.mxu3 }
 0x362   : > { %v817_v18 = vpop.f32.mrf.mxu2 }
 0x368   : > { %1344 = vmatmul.msk.bf16.vlgmr.msrb.gmra.mxu0 %vm311_vm4, %v1343_v13  ;;  %1345 = vmatmul.msk.bf16.vlgmr.msrb.gmra.mxu1 %vm311_vm4, %v1343_v13 }
 0x36a   : > { %1347 = vmatmul.msk.bf16.vlgmr.msrb.gmra.mxu2 %vm311_vm4, %v1346_v14  ;;  %1348 = vmatmul.msk.bf16.vlgmr.msrb.gmra.mxu3 %vm311_vm4, %v1346_v14  ;;  %v819_v20 = vpop.f32.mrf.mxu2 }
 0x378   : > { %1350 = vmatmul.msk.bf16.vlgmr.msra.gmra.mxu0 %vm311_vm4, %v1349_v15  ;;  %1351 = vmatmul.msk.bf16.vlgmr.msra.gmra.mxu1 %vm311_vm4, %v1349_v15 }
 0x37a   : > { %1353 = vmatmul.msk.bf16.vlgmr.msra.gmra.mxu2 %vm311_vm4, %v1352_v16  ;;  %1354 = vmatmul.msk.bf16.vlgmr.msra.gmra.mxu3 %vm311_vm4, %v1352_v16 }
 0x3c5   : > { %v852_v22 = vpop.f32.mrf.mxu0  ;;  %v865_v23 = vpop.f32.mrf.mxu1 }
 0x3c6   : > { %v853_v46 = vadd.f32 %v852_v22, %v817_v18  ;;  %v866_v47 = vadd.f32 %v865_v23, %v830_v19 }
 0x3cc   : > { %v893_v24 = vpop.f32.mrf.mxu2  ;;  %v906_v26 = vpop.f32.mrf.mxu3 }
 0x3cd   : > { %v854_v27 = vpop.f32.mrf.mxu0  ;;  %v867_v29 = vpop.f32.mrf.mxu1  ;;  %v910_v50 = vadd.f32 %v893_v24, %v853_v46  ;;  %v911_v51 = vadd.f32 %v906_v26, %v866_v47 }
 0x3d4   : > { %v895_v30 = vpop.f32.mrf.mxu2  ;;  %v908_v31 = vpop.f32.mrf.mxu3 }
 0x3d5   : > { %v948_v32 = vpop.f32.mrf.mxu0  ;;  %v961_v33 = vpop.f32.mrf.mxu1 }
 0x3d6   : > { %v965_v52 = vadd.f32 %v948_v32, %v910_v50  ;;  %v966_v53 = vadd.f32 %v961_v33, %v911_v51 }
 0x3dd   : > { %v989_v34 = vpop.f32.mrf.mxu2  ;;  %v1002_v35 = vpop.f32.mrf.mxu3 }
 0x3de   : > { %v950_v36 = vpop.f32.mrf.mxu0  ;;  %v963_v37 = vpop.f32.mrf.mxu1  ;;  %v1006_v56 = vadd.f32 %v989_v34, %v965_v52  ;;  %v1007_v57 = vadd.f32 %v1002_v35, %v966_v53 }
 0x3e5   : > { %v991_v38 = vpop.f32.mrf.mxu2  ;;  %v1004_v39 = vpop.f32.mrf.mxu3 }
 0x3e6   : > { %v1032_v40 = vpop.f32.mrf.mxu0  ;;  %v1045_v41 = vpop.f32.mrf.mxu1 }
 0x3e7   : > { %v1049_v61 = vadd.f32 %v1032_v40, %v1006_v56  ;;  %v1050_v8 = vadd.f32 %v1045_v41, %v1007_v57 }
 0x3ed   : > { %v1089_v42 = vpop.f32.mrf.mxu2  ;;  %v1102_v43 = vpop.f32.mrf.mxu3 }
 0x3ee   : > { %v1034_v44 = vpop.f32.mrf.mxu0  ;;  %v1047_v45 = vpop.f32.mrf.mxu1  ;;  %v1106_v62 = vadd.f32 %v1089_v42, %v1049_v61  ;;  %v1107_v25 = vadd.f32 %v1102_v43, %v1050_v8 }
 0x3f5   : > { %v1091_v54 = vpop.f32.mrf.mxu2  ;;  %v1104_v55 = vpop.f32.mrf.mxu3 }
 0x3f6   : > { %v1130_v58 = vpop.f32.mrf.mxu0  ;;  %v1143_v17 = vpop.f32.mrf.mxu1 }
 0x3f7   : > { %v1147_v28 = vadd.f32 %v1130_v58, %v1106_v62  ;;  %v1148_v63 = vadd.f32 %v1143_v17, %v1107_v25 }
 0x3fd   : > { %v1173_v1 = vpop.f32.mrf.mxu2  ;;  %v1186_v48 = vpop.f32.mrf.mxu3 }
 0x3fe   : > { %v1190_v49 = vadd.f32 %v1173_v1, %v1147_v28  ;;  %v1191_v2 = vadd.f32 %v1186_v48, %v1148_v63  ;;  %v1132_v3 = vpop.f32.mrf.mxu0  ;;  %v1145_v4 = vpop.f32.mrf.mxu1 }
 0x400   : > { %v1198_v6 = vadd.f32 %v1196_v5, %v1190_v49  ;;  %v1199_v7 = vadd.f32 %v1196_v5, %v1191_v2 }
 0x402   : > { %v1200_v9 = vsel %vm729_vm11, %v1198_v6, 0.0  ;;  %v1201_v10 = vsel %vm729_vm11, %v1199_v7, 0.0  ;;  %v1205_v59 = vmul.f32 %v1198_v6, %v1198_v6  ;;  %v1206_v60 = vmul.f32 %v1199_v7, %v1199_v7 }
 0x403   : > { %v1202_v11 = vadd.f32 %v1201_v10, %v1200_v9 }
 0x404   : > { %v1207_v12 = vsel %vm729_vm11, %v1205_v59, 0.0  ;;  %v1208_v13 = vsel %vm729_vm11, %v1206_v60, 0.0 }
 0x405   : > { %1203 = vadd.xlane.f32.xlu2 %v1202_v11  ;;  %v1209_v14 = vadd.f32 %v1208_v13, %v1207_v12  ;;  %v1175_v15 = vpop.f32.mrf.mxu2  ;;  %v1188_v16 = vpop.f32.mrf.mxu3 }
 0x407   : > { %1210 = vadd.xlane.f32.xlu0 %v1209_v14 }
 0x478   : > { %v1204_v18 = vpop.xlane.xlu2 %1203 }
 0x479   : > { %v1212_v19 = vmul.f32 0.00390625, %v1204_v18 }
 0x47a   : > { %v1211_v20 = vpop.xlane.xlu0 %1210 }
 0x47b   : > { %v1213_v21 = vmul.f32 0.00390625, %v1211_v20  ;;  %v1214_v22 = vmul.f32 %v1212_v19, %v1212_v19  ;;  %v1218_v34 = vsub.f32 %v1199_v7, %v1212_v19  ;;  %v1217_v36 = vsub.f32 %v1198_v6, %v1212_v19 }
 0x47d   : > { %v1215_v23 = vsub.f32 %v1213_v21, %v1214_v22 }
 0x47f   : > { %v1216_v24 = vmax.f32 %v1215_v23, 0.0 }
 0x481   : > { %v1219_v26 = vadd.f32 1e-05, %v1216_v24 }
 0x483   : > { %1456 = vrsqrt.f32 %v1219_v26  ;;  %vm1226_vm0 = vweird.f32 %v1219_v26 }
 0x489   : > { %v1457_v27 = vpop.eup %1456 }
 0x48a   : > { %v1221_v29 = vmul.f32 %v1457_v27, %v1219_v26  ;;  %vm1227_vm15 = vweird.f32 %v1457_v27 }
 0x48b   : > { %vm1228_vm1 = vmor %vm1226_vm0, %vm1227_vm15 }
 0x48c   : > { %v1222_v30 = vmul.f32 %v1457_v27, %v1221_v29 }
 0x48e   : > { %v1223_v31 = vmul.f32 0.5, %v1222_v30 }
 0x490   : > { %v1224_v32 = vsub.f32 1.5, %v1223_v31 }
 0x492   : > { %v1225_v33 = vmul.f32 %v1457_v27, %v1224_v32 }
 0x494   : > { %v1229_v35 = vsel %vm1228_vm1, %v1457_v27, %v1225_v33 }
 0x495   : > { %v1231_v37 = vmul.f32 %v1229_v35, %v1218_v34  ;;  %v1230_v38 = vmul.f32 %v1229_v35, %v1217_v36 }
 0x497   : > { %v1234_v39 = vrot.slane %v1231_v37, 4 }
 0x499   : > { %v1235_v40 = vsel %vm729_vm11, %v1230_v38, %v1234_v39 }
 0x49a   : > { %v1237_v41 = vadd.f32 %v1235_v40, %v1517_v0 }
 0x49c   : > { %1238 = vst [vmem:[%s224_s24] sm:$0xff] %v1237_v41 }
 0x49d PF: > { %s15_s18 = sadd.s32 1, %s1464_s18  }
 0x49e   : > { %p12_p4 = scmp.ge.s32.totalorder %s15_s18, 4  }
 0x4a0   :  { %14 = sbr.rel (!%p12_p4) target bundleno = 1 (0x1), region = 86 }

</bundles_post_ra>
